<compile_context>
chip_gen: v5e
topology: v5e:2x2
jax: 0.10.0
libtpu: 0.0.40
codegen_flags: <defaults>
</compile_context>

<pallas_src>
import numpy as np
import jax
import jax.numpy as jnp
from jax.experimental import pallas as pl
from jax.experimental.pallas import tpu as pltpu

LANE = 128      # vreg lane width (last dim)
SUBLANE = 8     # f32 sublane tile (second-to-last dim)
NEG_INF = -1e30


def _round_up(x, m):
    return ((x + m - 1) // m) * m


def _row_argmax_i32(x):
    """First index of the row maximum, as (rows, 1) int32 (iota + min trick)."""
    n = x.shape[-1]
    mx = jnp.max(x, axis=-1, keepdims=True)
    iota = jax.lax.broadcasted_iota(jnp.int32, x.shape, 1)
    return jnp.min(jnp.where(x >= mx, iota, n), axis=-1, keepdims=True).astype(jnp.int32)


# ----------------------------------------------------------------------------
# Single fused kernel: answer head + label LUT + DETR selection
# ----------------------------------------------------------------------------
def fused_vqa_kernel(txt_ref, img_ref, w1t_ref, w1i_ref, b1_ref, w2_ref, b2_ref,
                     lut_ref, detr_ref,
                     ans_logits_ref, ans_idx_ref, target_ref, sel_ref):
    # ---------- answer head:  concat(txt, img) @ W1 + b1  ->  @ W2 + b2 ----------
    # bf16 weights are upcast in-register; HBM->VMEM weight traffic stays halved.
    h = (jnp.dot(txt_ref[...], w1t_ref[...].astype(jnp.float32),
                 preferred_element_type=jnp.float32)
         + jnp.dot(img_ref[...], w1i_ref[...].astype(jnp.float32),
                   preferred_element_type=jnp.float32)
         + b1_ref[...])
    logits = jnp.dot(h, w2_ref[...].astype(jnp.float32),
                     preferred_element_type=jnp.float32) + b2_ref[...]
    ans_logits_ref[...] = logits                      # lane-dense (B_pad, A_pad) store

    # argmax taken directly on logits (== argmax of softmax; padded lanes = -1e30)
    ans_idx = _row_argmax_i32(logits)                 # (B_pad, 1)
    ans_idx_ref[...] = ans_idx

    # ---------- device-side answer_idx -> DETR target label (no host sync) ----------
    idx0 = ans_idx[0:1, :]                            # sample 0 drives the annotation path
    lut = lut_ref[...]                                # (1, A_pad) int32, -1 == unmapped
    lut_iota = jax.lax.broadcasted_iota(jnp.int32, lut.shape, 1)
    target = jnp.min(jnp.where(lut_iota == idx0, lut, jnp.int32(2 ** 30)),
                     axis=-1, keepdims=True)          # (1, 1) int32  (one-hot pick)
    target_ref[...] = target

    # ---------- DETR post-processing, straight from logits ----------
    dl = detr_ref[...]                                # (Q_pad, C_pad), padded = -1e30
    dmx = jnp.max(dl, axis=-1, keepdims=True)
    sum_e = jnp.sum(jnp.exp(dl - dmx), axis=-1, keepdims=True)
    dlabel = _row_argmax_i32(dl)
    # max softmax prob = 1 / sum_e  =>  (prob > 0.5)  <=>  (sum_e < 2.0);
    # no probs tensor is materialized or written back (unused downstream).
    # Padded query rows are all -1e30 -> sum_e == C_pad >= 2 -> never selected.
    sel = (dlabel == target) & (sum_e < 2.0) & (target >= 0)
    sel_ref[...] = sel.astype(jnp.int32)


def fused_vqa_call(txt, img, w1t, w1i, b1, w2, b2, lut, detr_logits):
    b_pad, h_txt = txt.shape
    h_img = img.shape[1]
    h_comb, a_pad = w2.shape
    q_pad, c_pad = detr_logits.shape

    flops = 2 * b_pad * (h_txt + h_img) * h_comb + 2 * b_pad * h_comb * a_pad
    bytes_accessed = (
        (w1t.size + w1i.size + w2.size) * 2                                  # bf16 weights
        + (b1.size + b2.size + txt.size + img.size + detr_logits.size) * 4   # f32 inputs
        + lut.size * 4
        + (b_pad * a_pad + b_pad + 1 + q_pad) * 4)                           # outputs
    cost = pl.CostEstimate(flops=flops, transcendentals=q_pad * c_pad,
                           bytes_accessed=bytes_accessed)

    vmem = pl.BlockSpec(memory_space=pltpu.MemorySpace.VMEM)
    return pl.pallas_call(
        fused_vqa_kernel,
        out_shape=(jax.ShapeDtypeStruct((b_pad, a_pad), jnp.float32),   # answer logits
                   jax.ShapeDtypeStruct((b_pad, 1), jnp.int32),         # answer argmax
                   jax.ShapeDtypeStruct((1, 1), jnp.int32),             # DETR target label
                   jax.ShapeDtypeStruct((q_pad, 1), jnp.int32)),        # DETR selection mask
        in_specs=[vmem] * 9,
        out_specs=(vmem, vmem, vmem, vmem),
        cost_estimate=cost,
    )(txt, img, w1t, w1i, b1, w2, b2, lut, detr_logits)


# ----------------------------------------------------------------------------
# Host-side parameter prep (one-time): pad answer dim to 128 lanes, bf16 weights,
# build int32 answer_idx -> DETR label LUT (-1 = no mapping).
# ----------------------------------------------------------------------------
def build_padded_params(w1_txt, w1_img, b1, w2, b2, answer_vocab,
                        answer_to_target_label, a_pad):
    num_answers = w2.shape[1]
    w2_p = jnp.pad(w2, ((0, 0), (0, a_pad - num_answers)))                 # zero cols
    b2_p = jnp.pad(b2, ((0, 0), (0, a_pad - num_answers)),
                   constant_values=NEG_INF)                                 # kill padded logits
    lut_np = np.full((1, a_pad), -1, dtype=np.int32)
    for i, a in enumerate(answer_vocab):
        lut_np[0, i] = answer_to_target_label.get(a, -1)
    return {
        "w1_txt": w1_txt.astype(jnp.bfloat16),
        "w1_img": w1_img.astype(jnp.bfloat16),
        "b1": b1.astype(jnp.float32),
        "w2": w2_p.astype(jnp.bfloat16),
        "b2": b2_p.astype(jnp.float32),
        "lut": jnp.asarray(lut_np),
    }


# ----------------------------------------------------------------------------
# Device forward: one jit -> one pallas_call.  Pads batch and DETR queries to
# 8 sublanes, DETR class dim to 128 lanes (padded logits = -1e30).
# ----------------------------------------------------------------------------
@jax.jit
def vqa_forward_device(txt, img, params, detr_logits):
    b = txt.shape[0]
    b_pad = _round_up(max(b, SUBLANE), SUBLANE)
    txt_p = jnp.pad(txt, ((0, b_pad - b), (0, 0)))
    img_p = jnp.pad(img, ((0, b_pad - b), (0, 0)))
    q, c = detr_logits.shape
    q_pad = _round_up(max(q, SUBLANE), SUBLANE)
    c_pad = _round_up(c, LANE)
    detr_p = jnp.pad(detr_logits, ((0, q_pad - q), (0, c_pad - c)),
                     constant_values=NEG_INF)
    ans_logits, ans_idx, target, sel = fused_vqa_call(
        txt_p, img_p,
        params["w1_txt"], params["w1_img"], params["b1"],
        params["w2"], params["b2"], params["lut"], detr_p)
    return ans_logits, ans_idx, target, sel[:q]


# ----------------------------------------------------------------------------
# End-to-end "forward" analogue:  (answer, bboxes, labels)
# ----------------------------------------------------------------------------
def vqa_with_annotation_forward(txt_feat, img_feat, params, detr_logits,
                                detr_pred_boxes, answer_vocab):
    # TODO(synk): BERT text encoder / ViLT VQA pipeline / DETR backbone /
    # MaskRCNN are pretrained external models; their outputs are the synthetic
    # feature tensors fed in here.  String / PIL / cv2 plumbing stays on host.
    ans_logits, ans_idx, target, sel = vqa_forward_device(
        txt_feat, img_feat, params, detr_logits)
    jax.block_until_ready((ans_logits, ans_idx, target, sel))   # single sync

    answer = answer_vocab[int(np.asarray(ans_idx)[0, 0])]
    sel_np = np.asarray(sel)[:, 0].astype(bool)
    boxes_np = np.asarray(detr_pred_boxes)
    bboxes = [boxes_np[i] for i in range(len(sel_np)) if sel_np[i]]
    labels = [answer] * len(bboxes)
    return answer, bboxes, labels, (ans_logits, ans_idx, target, sel)


if __name__ == "__main__":
    # -------- small, deterministic synthetic shapes --------
    B = 2            # batch
    H_TXT = 32       # BERT hidden (stand-in for 768)
    H_IMG = 64       # resnet img_enc_out_dim (stand-in for 2048)
    H_COMB = 512     # multi_modal_combine output dim (as in the module)
    NUM_ANSWERS = 16
    Q = 8            # DETR object queries (stand-in for 100)
    C = 20           # DETR classes incl. no-object (stand-in for 92)

    A_PAD = _round_up(NUM_ANSWERS, LANE)

    key = jax.random.PRNGKey(0)
    keys = jax.random.split(key, 9)

    txt_feat = jax.random.normal(keys[0], (B, H_TXT), dtype=jnp.float32)
    img_feat = jax.random.normal(keys[1], (B, H_IMG), dtype=jnp.float32)

    w1_txt = jax.random.normal(keys[2], (H_TXT, H_COMB), jnp.float32) * 0.05
    w1_img = jax.random.normal(keys[3], (H_IMG, H_COMB), jnp.float32) * 0.05
    b1 = jax.random.normal(keys[4], (1, H_COMB), jnp.float32) * 0.01
    w2 = jax.random.normal(keys[5], (H_COMB, NUM_ANSWERS), jnp.float32) * 0.05
    b2 = jax.random.normal(keys[6], (1, NUM_ANSWERS), jnp.float32) * 0.01

    # synthetic DETR head outputs (what detr_model(**detr_inputs) would give)
    detr_logits = jax.random.normal(keys[7], (Q, C), jnp.float32) * 3.0
    detr_pred_boxes = jax.random.uniform(keys[8], (Q, 4), jnp.float32)

    answer_vocab = [f"answer_{i}" for i in range(NUM_ANSWERS)]
    answer_to_target_label = {a: i % C for i, a in enumerate(answer_vocab)}

    params = build_padded_params(w1_txt, w1_img, b1, w2, b2,
                                 answer_vocab, answer_to_target_label, A_PAD)

    answer, bboxes, labels, (ans_logits, ans_idx, target, sel) = \
        vqa_with_annotation_forward(txt_feat, img_feat, params,
                                    detr_logits, detr_pred_boxes, answer_vocab)

    # -------- correctness check against plain-JAX reference --------
    b_pad = _round_up(max(B, SUBLANE), SUBLANE)
    txt_p = jnp.pad(txt_feat, ((0, b_pad - B), (0, 0)))
    img_p = jnp.pad(img_feat, ((0, b_pad - B), (0, 0)))
    w1t_f = params["w1_txt"].astype(jnp.float32)
    w1i_f = params["w1_img"].astype(jnp.float32)
    w2_f = params["w2"].astype(jnp.float32)
    logits_ref = (txt_p @ w1t_f + img_p @ w1i_f + params["b1"]) @ w2_f + params["b2"]
    np.testing.assert_allclose(np.asarray(ans_logits), np.asarray(logits_ref),
                               rtol=1e-4, atol=1e-4)

    ref_idx0 = int(np.argmax(np.asarray(logits_ref)[0, :NUM_ANSWERS]))
    assert int(np.asarray(ans_idx)[0, 0]) == ref_idx0
    assert answer == answer_vocab[ref_idx0]

    ref_target = answer_to_target_label.get(answer_vocab[ref_idx0], -1)
    assert int(np.asarray(target)[0, 0]) == ref_target

    probs_ref = jax.nn.softmax(detr_logits, axis=-1)
    label_ref = np.asarray(jnp.argmax(probs_ref, axis=-1))
    maxp_ref = np.asarray(jnp.max(probs_ref, axis=-1))
    sel_ref = (label_ref == ref_target) & (maxp_ref > 0.5) & (ref_target >= 0)
    np.testing.assert_array_equal(np.asarray(sel)[:, 0].astype(bool), sel_ref)

    ref_boxes = [np.asarray(detr_pred_boxes)[i] for i in range(Q) if sel_ref[i]]
    assert len(bboxes) == len(ref_boxes) and len(labels) == len(bboxes)

    print("KERNEL_OK")
</pallas_src>

<mosaic_0001>
module attributes {stable_mosaic.version = 11 : i64} {
  func.func @fused_vqa_kernel(%arg0: memref<8x32xf32, #tpu.memory_space<vmem>>, %arg1: memref<8x64xf32, #tpu.memory_space<vmem>>, %arg2: memref<32x512xbf16, #tpu.memory_space<vmem>>, %arg3: memref<64x512xbf16, #tpu.memory_space<vmem>>, %arg4: memref<1x512xf32, #tpu.memory_space<vmem>>, %arg5: memref<512x128xbf16, #tpu.memory_space<vmem>>, %arg6: memref<1x128xf32, #tpu.memory_space<vmem>>, %arg7: memref<1x128xi32, #tpu.memory_space<vmem>>, %arg8: memref<8x128xf32, #tpu.memory_space<vmem>>, %arg9: memref<8x128xf32, #tpu.memory_space<vmem>>, %arg10: memref<8x1xi32, #tpu.memory_space<vmem>>, %arg11: memref<1x1xi32, #tpu.memory_space<vmem>>, %arg12: memref<8x1xi32, #tpu.memory_space<vmem>>) attributes {dimension_semantics = [], scalar_prefetch = 0 : i64, scratch_operands = 0 : i64, tpu.core_type = #tpu.core_type<tc>} {
    %c0 = arith.constant 0 : index
    %c0_0 = arith.constant 0 : index
    %0 = vector.load %arg0[%c0, %c0_0] : memref<8x32xf32, #tpu.memory_space<vmem>>, vector<8x32xf32>
    %c0_1 = arith.constant 0 : index
    %c0_2 = arith.constant 0 : index
    %1 = vector.load %arg2[%c0_1, %c0_2] : memref<32x512xbf16, #tpu.memory_space<vmem>>, vector<32x512xbf16>
    %2 = arith.extf %1 : vector<32x512xbf16> to vector<32x512xf32>
    %cst = arith.constant dense<0.000000e+00> : vector<8x512xf32>
    %3 = tpu.matmul %0, %2, %cst {dimension_numbers = #tpu.dot_dimension_numbers<[1], [0], [0], [1], [0, 0, 1, 1], [], []>} : vector<8x32xf32>, vector<32x512xf32>, vector<8x512xf32> -> vector<8x512xf32>
    %c0_3 = arith.constant 0 : index
    %c0_4 = arith.constant 0 : index
    %4 = vector.load %arg1[%c0_3, %c0_4] : memref<8x64xf32, #tpu.memory_space<vmem>>, vector<8x64xf32>
    %c0_5 = arith.constant 0 : index
    %c0_6 = arith.constant 0 : index
    %5 = vector.load %arg3[%c0_5, %c0_6] : memref<64x512xbf16, #tpu.memory_space<vmem>>, vector<64x512xbf16>
    %6 = arith.extf %5 : vector<64x512xbf16> to vector<64x512xf32>
    %cst_7 = arith.constant dense<0.000000e+00> : vector<8x512xf32>
    %7 = tpu.matmul %4, %6, %cst_7 {dimension_numbers = #tpu.dot_dimension_numbers<[1], [0], [0], [1], [0, 0, 1, 1], [], []>} : vector<8x64xf32>, vector<64x512xf32>, vector<8x512xf32> -> vector<8x512xf32>
    %8 = arith.addf %3, %7 : vector<8x512xf32>
    %c0_8 = arith.constant 0 : index
    %c0_9 = arith.constant 0 : index
    %9 = vector.load %arg4[%c0_8, %c0_9] : memref<1x512xf32, #tpu.memory_space<vmem>>, vector<1x512xf32>
    %10 = vector.broadcast %9 : vector<1x512xf32> to vector<8x512xf32>
    %11 = arith.addf %8, %10 : vector<8x512xf32>
    %c0_10 = arith.constant 0 : index
    %c0_11 = arith.constant 0 : index
    %12 = vector.load %arg5[%c0_10, %c0_11] : memref<512x128xbf16, #tpu.memory_space<vmem>>, vector<512x128xbf16>
    %13 = arith.extf %12 : vector<512x128xbf16> to vector<512x128xf32>
    %cst_12 = arith.constant dense<0.000000e+00> : vector<8x128xf32>
    %14 = tpu.matmul %11, %13, %cst_12 {dimension_numbers = #tpu.dot_dimension_numbers<[1], [0], [0], [1], [0, 0, 1, 1], [], []>} : vector<8x512xf32>, vector<512x128xf32>, vector<8x128xf32> -> vector<8x128xf32>
    %c0_13 = arith.constant 0 : index
    %c0_14 = arith.constant 0 : index
    %15 = vector.load %arg6[%c0_13, %c0_14] : memref<1x128xf32, #tpu.memory_space<vmem>>, vector<1x128xf32>
    %16 = vector.broadcast %15 : vector<1x128xf32> to vector<8x128xf32>
    %17 = arith.addf %14, %16 : vector<8x128xf32>
    %c0_15 = arith.constant 0 : index
    %c0_16 = arith.constant 0 : index
    %18 = vector.load %arg9[%c0_15, %c0_16] : memref<8x128xf32, #tpu.memory_space<vmem>>, vector<8x128xf32>
    tpu.vector_store %arg9[%c0_15, %c0_16], %17 {strides = array<i32>} : memref<8x128xf32, #tpu.memory_space<vmem>>, vector<8x128xf32>,
    %cst_17 = arith.constant dense<0xFF800000> : vector<8xf32>
    %19 = vector.multi_reduction <maximumf>, %17, %cst_17 [1] : vector<8x128xf32> to vector<8xf32>
    %20 = vector.shape_cast %19 : vector<8xf32> to vector<8x1xf32>
    %21 = tpu.iota {dimensions = array<i32: 1>} : vector<8x128xi32>
    %22 = vector.broadcast %20 : vector<8x1xf32> to vector<8x128xf32>
    %23 = arith.cmpf oge, %17, %22 : vector<8x128xf32>
    %c128_i32 = arith.constant 128 : i32
    %24 = vector.broadcast %c128_i32 : i32 to vector<8x128xi32>
    %25 = arith.select %23, %21, %24 : vector<8x128xi1>, vector<8x128xi32>
    %cst_18 = arith.constant dense<2147483647> : vector<8xi32>
    %26 = vector.multi_reduction <minsi>, %25, %cst_18 [1] : vector<8x128xi32> to vector<8xi32>
    %27 = vector.shape_cast %26 : vector<8xi32> to vector<8x1xi32>
    %c0_19 = arith.constant 0 : index
    %c0_20 = arith.constant 0 : index
    %28 = vector.load %arg10[%c0_19, %c0_20] : memref<8x1xi32, #tpu.memory_space<vmem>>, vector<8x1xi32>
    tpu.vector_store %arg10[%c0_19, %c0_20], %27 {strides = array<i32>} : memref<8x1xi32, #tpu.memory_space<vmem>>, vector<8x1xi32>,
    %29 = vector.extract_strided_slice %27 {offsets = [0, 0], sizes = [1, 1], strides = [1, 1]} : vector<8x1xi32> to vector<1x1xi32>
    %c0_21 = arith.constant 0 : index
    %c0_22 = arith.constant 0 : index
    %30 = vector.load %arg7[%c0_21, %c0_22] : memref<1x128xi32, #tpu.memory_space<vmem>>, vector<1x128xi32>
    %31 = tpu.iota {dimensions = array<i32: 1>} : vector<1x128xi32>
    %32 = vector.broadcast %29 : vector<1x1xi32> to vector<1x128xi32>
    %33 = arith.cmpi eq, %31, %32 : vector<1x128xi32>
    %c1073741824_i32 = arith.constant 1073741824 : i32
    %34 = vector.broadcast %c1073741824_i32 : i32 to vector<1x128xi32>
    %35 = arith.select %33, %30, %34 : vector<1x128xi1>, vector<1x128xi32>
    %cst_23 = arith.constant dense<2147483647> : vector<1xi32>
    %36 = vector.multi_reduction <minsi>, %35, %cst_23 [1] : vector<1x128xi32> to vector<1xi32>
    %37 = vector.shape_cast %36 : vector<1xi32> to vector<1x1xi32>
    %c0_24 = arith.constant 0 : index
    %c0_25 = arith.constant 0 : index
    %38 = vector.load %arg11[%c0_24, %c0_25] : memref<1x1xi32, #tpu.memory_space<vmem>>, vector<1x1xi32>
    tpu.vector_store %arg11[%c0_24, %c0_25], %37 {strides = array<i32>} : memref<1x1xi32, #tpu.memory_space<vmem>>, vector<1x1xi32>,
    %c0_26 = arith.constant 0 : index
    %c0_27 = arith.constant 0 : index
    %39 = vector.load %arg8[%c0_26, %c0_27] : memref<8x128xf32, #tpu.memory_space<vmem>>, vector<8x128xf32>
    %cst_28 = arith.constant dense<0xFF800000> : vector<8xf32>
    %40 = vector.multi_reduction <maximumf>, %39, %cst_28 [1] : vector<8x128xf32> to vector<8xf32>
    %41 = vector.shape_cast %40 : vector<8xf32> to vector<8x1xf32>
    %42 = vector.broadcast %41 : vector<8x1xf32> to vector<8x128xf32>
    %43 = arith.subf %39, %42 : vector<8x128xf32>
    %44 = math.exp %43 : vector<8x128xf32>
    %cst_29 = arith.constant dense<0.000000e+00> : vector<8xf32>
    %45 = vector.multi_reduction <add>, %44, %cst_29 [1] : vector<8x128xf32> to vector<8xf32>
    %46 = vector.shape_cast %45 : vector<8xf32> to vector<8x1xf32>
    %cst_30 = arith.constant dense<0xFF800000> : vector<8xf32>
    %47 = vector.multi_reduction <maximumf>, %39, %cst_30 [1] : vector<8x128xf32> to vector<8xf32>
    %48 = vector.shape_cast %47 : vector<8xf32> to vector<8x1xf32>
    %49 = tpu.iota {dimensions = array<i32: 1>} : vector<8x128xi32>
    %50 = vector.broadcast %48 : vector<8x1xf32> to vector<8x128xf32>
    %51 = arith.cmpf oge, %39, %50 : vector<8x128xf32>
    %c128_i32_31 = arith.constant 128 : i32
    %52 = vector.broadcast %c128_i32_31 : i32 to vector<8x128xi32>
    %53 = arith.select %51, %49, %52 : vector<8x128xi1>, vector<8x128xi32>
    %cst_32 = arith.constant dense<2147483647> : vector<8xi32>
    %54 = vector.multi_reduction <minsi>, %53, %cst_32 [1] : vector<8x128xi32> to vector<8xi32>
    %55 = vector.shape_cast %54 : vector<8xi32> to vector<8x1xi32>
    %56 = vector.broadcast %37 : vector<1x1xi32> to vector<8x1xi32>
    %57 = arith.cmpi eq, %55, %56 : vector<8x1xi32>
    %cst_33 = arith.constant 2.000000e+00 : f32
    %58 = vector.broadcast %cst_33 : f32 to vector<8x1xf32>
    %59 = arith.cmpf olt, %46, %58 : vector<8x1xf32>
    %60 = arith.andi %57, %59 : vector<8x1xi1>
    %c0_i32 = arith.constant 0 : i32
    %61 = vector.broadcast %c0_i32 : i32 to vector<1x1xi32>
    %62 = arith.cmpi sge, %37, %61 : vector<1x1xi32>
    %63 = vector.broadcast %62 : vector<1x1xi1> to vector<8x1xi1>
    %64 = arith.andi %60, %63 : vector<8x1xi1>
    %65 = arith.extui %64 : vector<8x1xi1> to vector<8x1xi32>
    %c0_34 = arith.constant 0 : index
    %c0_35 = arith.constant 0 : index
    %66 = vector.load %arg12[%c0_34, %c0_35] : memref<8x1xi32, #tpu.memory_space<vmem>>, vector<8x1xi32>
    tpu.vector_store %arg12[%c0_34, %c0_35], %65 {strides = array<i32>} : memref<8x1xi32, #tpu.memory_space<vmem>>, vector<8x1xi32>,
    return
  }
}

</mosaic_0001>

<bundles_post_ra>
// kernel: vqa_forward_device.1
= control target key start
LH: loop header
LB: loop body
LE: loop exit
PB: predicated region body
PF: predicated region fallthrough
CT: control target
= control target key end

     0   :  { %18 = vsyncpa [#allocation3], 0  ;;  %s1106_s0 = inlined_call_operand.vmem [shape: f32[8,32], index: 0, kind: input, shape index: {}]   ;;  %s1107_s1 = inlined_call_operand.vmem [shape: f32[8,64], index: 1, kind: input, shape index: {}]   ;;  %s1108_s2 = inlined_call_operand.hbm [shape: bf16[32,512], index: 2, kind: input, shape index: {}]   ;;  %s1109_s3 = inlined_call_operand.hbm [shape: bf16[64,512], index: 3, kind: input, shape index: {}]   ;;  %s1110_s4 = inlined_call_operand.vmem [shape: f32[1,512], index: 4, kind: input, shape index: {}]   ;;  %s1111_s5 = inlined_call_operand.hbm [shape: bf16[512,128], index: 5, kind: input, shape index: {}]   ;;  %s1112_s6 = inlined_call_operand.vmem [shape: f32[1,128], index: 6, kind: input, shape index: {}]   ;;  %s1113_s7 = inlined_call_operand.vmem [shape: s32[1,128], index: 7, kind: input, shape index: {}]   ;;  %s1114_s8 = inlined_call_operand.vmem [shape: f32[8,128], index: 8, kind: input, shape index: {}]   ;;  %s1115_s9 = inlined_call_operand.hbm [shape: f32[8,128], index: 9, kind: output, shape index: {0}]   ;;  %s1116_s10 = inlined_call_operand.vmem [shape: s32[8,1], index: 10, kind: output, shape index: {1}]   ;;  %s1117_s11 = inlined_call_operand.hbm [shape: s32[1,1], index: 11, kind: output, shape index: {2}]   ;;  %s1118_s12 = inlined_call_operand.vmem [shape: s32[8,1], index: 12, kind: output, shape index: {3}]  }
   0x1   :  { %19 = vsyncpa [#allocation6], 0 }
   0x2   :  { %20 = vsyncpa [#allocation4], 0 }
   0x3   :  { %21 = vsyncpa [#allocation10], 0  ;;  %s43_s23 = sshll.u32 %s1109_s3, 4  ;;  %s982_s24 = smov [#allocation5]   ;;  %s44_s23 = int_to_ptr.hbm [resolvable:$true] %s43_s23 }
   0x4   :  { %s45_s25 = sshll.u32 %s982_s24, 4  ;;  %s30_s28 = sshll.u32 %s1108_s2, 4  ;;  %s46_s25 = int_to_ptr.vmem [resolvable:$true] %s45_s25  ;;  %s31_s28 = int_to_ptr.hbm [resolvable:$true] %s30_s28 }
   0x5   :  { %s983_s29 = smov 256   ;;  %s984_s30 = smov 16  }
   0x6   :  { %51 = dma.hbm_to_vmem [thread:$0]  %s44_s23, 2048, %s46_s25, [#allocation6], %s983_s29, %s983_s29, %s984_s30  }
   0x7   :  { %s985_s13 = smov [#allocation2]   ;;  %s58_s17 = sshll.u32 %s1111_s5, 4  ;;  %s59_s17 = int_to_ptr.hbm [resolvable:$true] %s58_s17 }
   0x8   :  { %s32_s14 = sshll.u32 %s985_s13, 4  ;;  %s986_s3 = smov [#allocation7]   ;;  %s33_s14 = int_to_ptr.vmem [resolvable:$true] %s32_s14 }
   0x9   :  { %38 = dma.hbm_to_vmem [thread:$0]  %s31_s28, 1024, %s33_s14, [#allocation3], %s983_s29, %s983_s29, %s984_s30  }
   0xa   :  { %s60_s18 = sshll.u32 %s986_s3, 4  ;;  %s987_s19 = smov 64   ;;  %s61_s18 = int_to_ptr.vmem [resolvable:$true] %s60_s18 }
   0xb   :  { %s988_s20 = smov 4  }
   0xc   :  { %66 = dma.hbm_to_vmem [thread:$0]  %s59_s17, 4096, %s61_s18, [#allocation6], %s987_s19, %s987_s19, %s988_s20  }
   0xd   :  { %974 = dma.done.wait [#allocation3], 1024  }
   0xe   :  { %975 = vsyncadd [#allocation3], 4294966272 }
   0xf   :  { %976 = dma.done.wait [#allocation6], 6144  }
  0x10   :  { %977 = vsyncadd [#allocation6], 4294961152  ;;  %v125_v0 = vld [vmem:[#allocation5 + $0x70] sm:$0xff]  ;;  %v126_v1 = vld [vmem:[#allocation5 + $0x78] sm:$0xff]  ;;  %vm159_vm0 = vcmask 523264   ;;  %vm243_vm1 = vcmask 261120  }
  0x11   :  { %v123_v2 = vld [vmem:[#allocation5 + $0x60] sm:$0xff]  ;;  %v155_v3 = vunpack.c.l.bf16 %v125_v0  ;;  %v157_v4 = vunpack.c.l.bf16 %v126_v1  ;;  %v158_v5 = vunpack.c.h.bf16 %v126_v1  ;;  %v124_v7 = vld [vmem:[#allocation5 + $0x68] sm:$0xff]  ;;  %v121_v8 = vld [vmem:[#allocation5 + $0x50] sm:$0xff]  ;;  %v156_v10 = vunpack.c.h.bf16 %v125_v0  ;;  %s639_s30 = sshll.u32 %s1115_s9, 4  ;;  %s990_s13 = smov [#allocation9]   ;;  %s640_s30 = int_to_ptr.hbm [resolvable:$true] %s639_s30 }
  0x12   :  { %v151_v6 = vunpack.c.l.bf16 %v123_v2  ;;  %v122_v9 = vld [vmem:[#allocation5 + $0x58] sm:$0xff]  ;;  %v153_v11 = vunpack.c.l.bf16 %v124_v7  ;;  %v154_v12 = vunpack.c.h.bf16 %v124_v7  ;;  %v119_v13 = vld [vmem:[#allocation5 + $0x40] sm:$0xff]  ;;  %v120_v14 = vld [vmem:[#allocation5 + $0x48] sm:$0xff]  ;;  %v147_v15 = vunpack.c.l.bf16 %v121_v8  ;;  %s650_s14 = sshll.u32 %s990_s13, 4  ;;  %s652_s17 = sshll.u32 %s1117_s11, 4  ;;  %s651_s14 = int_to_ptr.vmem [resolvable:$true] %s650_s14  ;;  %s653_s17 = int_to_ptr.hbm [resolvable:$true] %s652_s17 }
  0x13   :  { %171 = vmatpush.msra.mxu0 %v155_v3  ;;  %211 = vmatpush.msra.mxu2 %v157_v4  ;;  %v152_v16 = vunpack.c.h.bf16 %v123_v2  ;;  %v149_v17 = vunpack.c.l.bf16 %v122_v9  ;;  %v150_v18 = vunpack.c.h.bf16 %v122_v9  ;;  %v148_v19 = vunpack.c.h.bf16 %v121_v8  ;;  %v117_v20 = vld [vmem:[#allocation5 + $0x30] sm:$0xff]  ;;  %v118_v21 = vld [vmem:[#allocation5 + $0x38] sm:$0xff]  ;;  %v115_v26 = vld [vmem:[#allocation5 + $0x20] sm:$0xff] }
  0x14   :  { %231 = vmatpush.msra.mxu3 %v158_v5  ;;  %191 = vmatpush.msra.mxu1 %v156_v10  ;;  %v143_v22 = vunpack.c.l.bf16 %v119_v13  ;;  %v145_v23 = vunpack.c.l.bf16 %v120_v14  ;;  %v146_v24 = vunpack.c.h.bf16 %v120_v14  ;;  %v144_v25 = vunpack.c.h.bf16 %v119_v13  ;;  %v116_v27 = vld [vmem:[#allocation5 + $0x28] sm:$0xff]  ;;  %v113_v32 = vld [vmem:[#allocation5 + $0x10] sm:$0xff]  ;;  %v114_v33 = vld [vmem:[#allocation5 + $0x18] sm:$0xff] }
  0x15   :  { %172 = vmatpush.msra.mxu0 %v151_v6  ;;  %212 = vmatpush.msra.mxu2 %v153_v11  ;;  %v139_v28 = vunpack.c.l.bf16 %v117_v20  ;;  %v141_v29 = vunpack.c.l.bf16 %v118_v21  ;;  %v142_v30 = vunpack.c.h.bf16 %v118_v21  ;;  %v140_v31 = vunpack.c.h.bf16 %v117_v20  ;;  %v111_v38 = vld [vmem:[#allocation5] sm:$0xff]  ;;  %v112_v39 = vld [vmem:[#allocation5 + $0x8] sm:$0xff]  ;;  %v93_v46 = vld [vmem:[#allocation2 + $0x38] sm:$0xff] }
  0x16   :  { %232 = vmatpush.msra.mxu3 %v154_v12  ;;  %192 = vmatpush.msra.mxu1 %v152_v16  ;;  %v135_v34 = vunpack.c.l.bf16 %v115_v26  ;;  %v137_v35 = vunpack.c.l.bf16 %v116_v27  ;;  %v138_v36 = vunpack.c.h.bf16 %v116_v27  ;;  %v136_v37 = vunpack.c.h.bf16 %v115_v26  ;;  %v92_v48 = vld [vmem:[#allocation2 + $0x30] sm:$0xff]  ;;  %v110_v49 = vld [vmem:[%s1107_s1] sm:$0xff]  ;;  %v91_v50 = vld [vmem:[#allocation2 + $0x28] sm:$0xff] }
  0x17   :  { %173 = vmatpush.msra.mxu0 %v147_v15  ;;  %213 = vmatpush.msra.mxu2 %v149_v17  ;;  %v131_v40 = vunpack.c.l.bf16 %v113_v32  ;;  %v133_v41 = vunpack.c.l.bf16 %v114_v33  ;;  %v134_v42 = vunpack.c.h.bf16 %v114_v33  ;;  %v132_v43 = vunpack.c.h.bf16 %v113_v32  ;;  %v90_v53 = vld [vmem:[#allocation2 + $0x20] sm:$0xff]  ;;  %v89_v56 = vld [vmem:[#allocation2 + $0x18] sm:$0xff]  ;;  %v88_v58 = vld [vmem:[#allocation2 + $0x10] sm:$0xff] }
  0x18   :  { %233 = vmatpush.msra.mxu3 %v150_v18  ;;  %193 = vmatpush.msra.mxu1 %v148_v19  ;;  %v127_v44 = vunpack.c.l.bf16 %v111_v38  ;;  %v129_v45 = vunpack.c.l.bf16 %v112_v39  ;;  %v130_v47 = vunpack.c.h.bf16 %v112_v39  ;;  %v108_v51 = vunpack.c.l.bf16 %v93_v46  ;;  %v87_v61 = vld [vmem:[#allocation2 + $0x8] sm:$0xff]  ;;  %v86_v0 = vld [vmem:[#allocation2] sm:$0xff]  ;;  %v816_v7 = vld [vmem:[#allocation7 + $0x38] sm:$0xff]  }
  0x19   :  { %174 = vmatpush.msra.mxu0 %v143_v22  ;;  %214 = vmatpush.msra.mxu2 %v145_v23  ;;  %v128_v52 = vunpack.c.h.bf16 %v111_v38  ;;  %v106_v54 = vunpack.c.l.bf16 %v92_v48  ;;  %v109_v55 = vunpack.c.h.bf16 %v93_v46  ;;  %v104_v57 = vunpack.c.l.bf16 %v91_v50  ;;  %v832_v9 = vld [vmem:[#allocation7 + $0xb8] sm:$0xff]   ;;  %v85_v10 = vld [vmem:[%s1106_s0] sm:$0xff]  ;;  %v815_v15 = vld [vmem:[#allocation7 + $0x30] sm:$0xff]  }
  0x1a   :  { %234 = vmatpush.msra.mxu3 %v146_v24  ;;  %194 = vmatpush.msra.mxu1 %v144_v25  ;;  %v102_v59 = vunpack.c.l.bf16 %v90_v53  ;;  %v107_v60 = vunpack.c.h.bf16 %v92_v48  ;;  %v105_v62 = vunpack.c.h.bf16 %v91_v50  ;;  %v100_v63 = vunpack.c.l.bf16 %v89_v56  ;;  %v824_v11 = vld [vmem:[#allocation7 + $0x78] sm:$0xff]   ;;  %v831_v19 = vld [vmem:[#allocation7 + $0xb0] sm:$0xff]   ;;  %v814_v26 = vld [vmem:[#allocation7 + $0x28] sm:$0xff]  }
  0x1b   :  { %175 = vmatpush.msra.mxu0 %v139_v28  ;;  %215 = vmatpush.msra.mxu2 %v141_v29  ;;  %v98_v1 = vunpack.c.l.bf16 %v88_v58  ;;  %v103_v2 = vunpack.c.h.bf16 %v90_v53  ;;  %v101_v3 = vunpack.c.h.bf16 %v89_v56  ;;  %v96_v4 = vunpack.c.l.bf16 %v87_v61  ;;  %v840_v14 = vld [vmem:[#allocation7 + $0xf8] sm:$0xff]   ;;  %v823_v20 = vld [vmem:[#allocation7 + $0x70] sm:$0xff]   ;;  %v822_v32 = vld [vmem:[#allocation7 + $0x68] sm:$0xff]  }
  0x1c   :  { %235 = vmatpush.msra.mxu3 %v142_v30  ;;  %195 = vmatpush.msra.mxu1 %v140_v31  ;;  %v94_v5 = vunpack.c.l.bf16 %v86_v0  ;;  %v99_v6 = vunpack.c.h.bf16 %v88_v58  ;;  %v97_v8 = vunpack.c.h.bf16 %v87_v61  ;;  %v95_v12 = vunpack.c.h.bf16 %v86_v0  ;;  %v839_v25 = vld [vmem:[#allocation7 + $0xf0] sm:$0xff]   ;;  %v830_v31 = vld [vmem:[#allocation7 + $0xa8] sm:$0xff]   ;;  %v813_v38 = vld [vmem:[#allocation7 + $0x20] sm:$0xff]  }
  0x1d   :  { %176 = vmatpush.msra.mxu0 %v135_v34  ;;  %216 = vmatpush.msra.mxu2 %v137_v35  ;;  %v713_v13 = vunpack.c.h.bf16 %v816_v7  ;;  %v777_v16 = vunpack.c.h.bf16 %v832_v9  ;;  %v712_v17 = vunpack.c.l.bf16 %v816_v7  ;;  %v745_v18 = vunpack.c.h.bf16 %v824_v11  ;;  %v812_v48 = vld [vmem:[#allocation7 + $0x18] sm:$0xff]   ;;  %v829_v56 = vld [vmem:[#allocation7 + $0xa0] sm:$0xff]   ;;  %v811_v61 = vld [vmem:[#allocation7 + $0x10] sm:$0xff]  }
  0x1e   :  { %236 = vmatpush.msra.mxu3 %v138_v36  ;;  %196 = vmatpush.msra.mxu1 %v136_v37  ;;  %v809_v21 = vunpack.c.h.bf16 %v840_v14  ;;  %v776_v22 = vunpack.c.l.bf16 %v832_v9  ;;  %v709_v23 = vunpack.c.h.bf16 %v815_v15  ;;  %v744_v24 = vunpack.c.l.bf16 %v824_v11  ;;  %v838_v37 = vld [vmem:[#allocation7 + $0xe8] sm:$0xff]  }
  0x1f   :  { %177 = vmatpush.msra.mxu0 %v131_v40  ;;  %217 = vmatpush.msra.mxu2 %v133_v41  ;;  %v808_v27 = vunpack.c.l.bf16 %v840_v14  ;;  %v773_v28 = vunpack.c.h.bf16 %v831_v19  ;;  %v708_v29 = vunpack.c.l.bf16 %v815_v15  ;;  %v741_v30 = vunpack.c.h.bf16 %v823_v20  ;;  %v810_v9 = vld [vmem:[#allocation7 + $0x8] sm:$0xff]   ;;  %v827_v15 = vld [vmem:[#allocation7 + $0x90] sm:$0xff]  }
  0x20   :  { %237 = vmatpush.msra.mxu3 %v134_v42  ;;  %197 = vmatpush.msra.mxu1 %v132_v43  ;;  %v805_v33 = vunpack.c.h.bf16 %v839_v25  ;;  %v772_v34 = vunpack.c.l.bf16 %v831_v19  ;;  %v705_v35 = vunpack.c.h.bf16 %v814_v26  ;;  %v740_v36 = vunpack.c.l.bf16 %v823_v20  ;;  %v821_v43 = vld [vmem:[#allocation7 + $0x60] sm:$0xff]   ;;  %v818_v14 = vld [vmem:[#allocation7 + $0x48] sm:$0xff]  }
  0x21   :  { %178 = vmatpush.msra.mxu0 %v127_v44  ;;  %218 = vmatpush.msra.mxu2 %v129_v45  ;;  %v804_v39 = vunpack.c.l.bf16 %v839_v25  ;;  %v769_v40 = vunpack.c.h.bf16 %v830_v31  ;;  %v704_v41 = vunpack.c.l.bf16 %v814_v26  ;;  %v737_v42 = vunpack.c.h.bf16 %v822_v32  ;;  %v817_v26 = vld [vmem:[#allocation7 + $0x40] sm:$0xff]  }
  0x22   :  { %238 = vmatpush.msra.mxu3 %v130_v47  ;;  %674 = vmatmul.msk.f32.vlgmr.msra.gmra.mxu0 %vm159_vm0, %v110_v49  ;;  %v801_v44 = vunpack.c.h.bf16 %v838_v37  ;;  %v768_v45 = vunpack.c.l.bf16 %v830_v31  ;;  %v701_v46 = vunpack.c.h.bf16 %v813_v38  ;;  %v736_v47 = vunpack.c.l.bf16 %v822_v32 }
  0x23   :  { %676 = vmatmul.msk.f32.vlgmr.msra.gmra.mxu2 %vm159_vm0, %v110_v49  ;;  %677 = vmatmul.msk.f32.vlgmr.msra.gmra.mxu3 %vm159_vm0, %v110_v49  ;;  %v700_v50 = vunpack.c.l.bf16 %v813_v38  ;;  %v732_v53 = vunpack.c.l.bf16 %v821_v43  ;;  %v764_v0 = vunpack.c.l.bf16 %v829_v56  ;;  %v757_v19 = vunpack.c.h.bf16 %v827_v15 }
  0x24   :  { %299 = vmatpush.msrb.mxu2 %v108_v51  ;;  %198 = vmatpush.msra.mxu1 %v128_v52  ;;  %v733_v51 = vunpack.c.h.bf16 %v821_v43  ;;  %v697_v52 = vunpack.c.h.bf16 %v812_v48  ;;  %vm574_vm4 = vcmask 7168   ;;  %vm579_vm5 = vcmask 1040384  }
  0x25   :  { %259 = vmatpush.msrb.mxu0 %v106_v54  ;;  %319 = vmatpush.msrb.mxu3 %v109_v55  ;;  %v696_v54 = vunpack.c.l.bf16 %v812_v48  ;;  %v820_v55 = vld [vmem:[#allocation7 + $0x58] sm:$0xff]   ;;  %vm595_vm10 = vcmask 0  }
  0x26   :  { %675 = vmatmul.msk.f32.vlgmr.msra.gmra.mxu1 %vm159_vm0, %v110_v49  ;;  %300 = vmatpush.msrb.mxu2 %v104_v57  ;;  %v800_v49 = vunpack.c.l.bf16 %v838_v37  ;;  %v837_v57 = vld [vmem:[#allocation7 + $0xe0] sm:$0xff]   ;;  %v729_v58 = vunpack.c.h.bf16 %v820_v55 }
  0x27   :  { %260 = vmatpush.msrb.mxu0 %v102_v59  ;;  %279 = vmatpush.msrb.mxu1 %v107_v60  ;;  %v765_v59 = vunpack.c.h.bf16 %v829_v56  ;;  %v797_v60 = vunpack.c.h.bf16 %v837_v57  ;;  %v833_v37 = vld [vmem:[#allocation7 + $0xc0] sm:$0xff]  }
  0x28   :  { %320 = vmatpush.msrb.mxu3 %v105_v62  ;;  %301 = vmatpush.msrb.mxu2 %v100_v63  ;;  %v693_v62 = vunpack.c.h.bf16 %v811_v61  ;;  %v728_v63 = vunpack.c.l.bf16 %v820_v55 }
  0x29   :  { %261 = vmatpush.msrb.mxu0 %v98_v1  ;;  %280 = vmatpush.msrb.mxu1 %v103_v2  ;;  %v796_v1 = vunpack.c.l.bf16 %v837_v57  ;;  %v692_v2 = vunpack.c.l.bf16 %v811_v61 }
  0x2a   :  { %321 = vmatpush.msrb.mxu3 %v101_v3  ;;  %302 = vmatpush.msrb.mxu2 %v96_v4  ;;  %v819_v3 = vld [vmem:[#allocation7 + $0x50] sm:$0xff]   ;;  %v828_v4 = vld [vmem:[#allocation7 + $0x98] sm:$0xff]  }
  0x2b   :  { %262 = vmatpush.msrb.mxu0 %v94_v5  ;;  %281 = vmatpush.msrb.mxu1 %v99_v6  ;;  %v836_v5 = vld [vmem:[#allocation7 + $0xd8] sm:$0xff]   ;;  %v725_v6 = vunpack.c.h.bf16 %v819_v3  ;;  %v761_v7 = vunpack.c.h.bf16 %v828_v4  ;;  %v724_v11 = vunpack.c.l.bf16 %v819_v3 }
  0x2c   :  { %322 = vmatpush.msrb.mxu3 %v97_v8  ;;  %678 = vmatmul.msk.f32.vlgmr.msrb.gmra.mxu0 %vm243_vm1, %v85_v10  ;;  %v793_v8 = vunpack.c.h.bf16 %v836_v5 }
  0x2d   :  { %680 = vmatmul.msk.f32.vlgmr.msrb.gmra.mxu2 %vm243_vm1, %v85_v10  ;;  %681 = vmatmul.msk.f32.vlgmr.msrb.gmra.mxu3 %vm243_vm1, %v85_v10 }
  0x2e   :  { %282 = vmatpush.msrb.mxu1 %v95_v12  ;;  %473 = vmatpush.msra.mxu0 %v713_v13  ;;  %v760_v12 = vunpack.c.l.bf16 %v828_v4  ;;  %v792_v13 = vunpack.c.l.bf16 %v836_v5 }
  0x2f   :  { %679 = vmatmul.msk.f32.vlgmr.msrb.gmra.mxu1 %vm243_vm1, %v85_v10  ;;  %513 = vmatpush.msra.mxu2 %v777_v16  ;;  %v689_v10 = vunpack.c.h.bf16 %v810_v9  ;;  %v835_v16 = vld [vmem:[#allocation7 + $0xd0] sm:$0xff]  }
  0x30   :  { %474 = vmatpush.msra.mxu0 %v712_v17  ;;  %493 = vmatpush.msra.mxu1 %v745_v18  ;;  %v688_v17 = vunpack.c.l.bf16 %v810_v9  ;;  %v721_v18 = vunpack.c.h.bf16 %v818_v14  ;;  %v789_v20 = vunpack.c.h.bf16 %v835_v16  ;;  %v788_v25 = vunpack.c.l.bf16 %v835_v16 }
  0x31   :  { %533 = vmatpush.msra.mxu3 %v809_v21  ;;  %514 = vmatpush.msra.mxu2 %v776_v22  ;;  %v683_v21 = vld [vmem:[#allocation7] sm:$0xff]  }
  0x32   :  { %475 = vmatpush.msra.mxu0 %v709_v23  ;;  %494 = vmatpush.msra.mxu1 %v744_v24  ;;  %v685_v22 = vunpack.c.h.bf16 %v683_v21  ;;  %v720_v23 = vunpack.c.l.bf16 %v818_v14  ;;  %v756_v24 = vunpack.c.l.bf16 %v827_v15 }
  0x33   :  { %534 = vmatpush.msra.mxu3 %v808_v27  ;;  %515 = vmatpush.msra.mxu2 %v773_v28  ;;  %v826_v27 = vld [vmem:[#allocation7 + $0x88] sm:$0xff]  }
  0x34   :  { %476 = vmatpush.msra.mxu0 %v708_v29  ;;  %495 = vmatpush.msra.mxu1 %v741_v30  ;;  %v834_v28 = vld [vmem:[#allocation7 + $0xc8] sm:$0xff]   ;;  %v684_v29 = vunpack.c.l.bf16 %v683_v21  ;;  %v717_v30 = vunpack.c.h.bf16 %v817_v26  ;;  %v753_v31 = vunpack.c.h.bf16 %v826_v27 }
  0x35   :  { %535 = vmatpush.msra.mxu3 %v805_v33  ;;  %516 = vmatpush.msra.mxu2 %v772_v34  ;;  %v785_v32 = vunpack.c.h.bf16 %v834_v28  ;;  %v716_v33 = vunpack.c.l.bf16 %v817_v26  ;;  %v752_v34 = vunpack.c.l.bf16 %v826_v27 }
  0x36   :  { %477 = vmatpush.msra.mxu0 %v705_v35  ;;  %496 = vmatpush.msra.mxu1 %v740_v36  ;;  %v784_v35 = vunpack.c.l.bf16 %v834_v28  ;;  %v825_v36 = vld [vmem:[#allocation7 + $0x80] sm:$0xff]  }
  0x37   :  { %536 = vmatpush.msra.mxu3 %v804_v39  ;;  %517 = vmatpush.msra.mxu2 %v769_v40  ;;  %v749_v38 = vunpack.c.h.bf16 %v825_v36  ;;  %v781_v39 = vunpack.c.h.bf16 %v833_v37  ;;  %v748_v40 = vunpack.c.l.bf16 %v825_v36 }
  0x38   :  { %478 = vmatpush.msra.mxu0 %v704_v41  ;;  %497 = vmatpush.msra.mxu1 %v737_v42  ;;  %v780_v41 = vunpack.c.l.bf16 %v833_v37 }
  0x39   :  { %537 = vmatpush.msra.mxu3 %v801_v44  ;;  %518 = vmatpush.msra.mxu2 %v768_v45  ;;  %v327_v44 = vld [vmem:[%s1110_s4] sm:$0xf] }
  0x3a   :  { %479 = vmatpush.msra.mxu0 %v701_v46  ;;  %498 = vmatpush.msra.mxu1 %v736_v47  ;;  %v329_v47 = vperm.slane %v327_v44, 0  ;;  %v331_v55 = vperm.slane %v327_v44, 2  ;;  %v332_v56 = vperm.slane %v327_v44, 3 }
  0x3b   :  { %538 = vmatpush.msra.mxu3 %v800_v49  ;;  %519 = vmatpush.msra.mxu2 %v765_v59 }
  0x3c   :  { %480 = vmatpush.msra.mxu0 %v700_v50  ;;  %499 = vmatpush.msra.mxu1 %v733_v51  ;;  %v330_v50 = vperm.slane %v327_v44, 1 }
  0x3d   :  { %539 = vmatpush.msra.mxu3 %v797_v60  ;;  %520 = vmatpush.msra.mxu2 %v764_v0 }
  0x3e   :  { %481 = vmatpush.msra.mxu0 %v697_v52  ;;  %500 = vmatpush.msra.mxu1 %v732_v53 }
  0x3f   :  { %540 = vmatpush.msra.mxu3 %v796_v1  ;;  %521 = vmatpush.msra.mxu2 %v761_v7 }
  0x40   :  { %482 = vmatpush.msra.mxu0 %v696_v54  ;;  %501 = vmatpush.msra.mxu1 %v729_v58 }
  0x41   :  { %541 = vmatpush.msra.mxu3 %v793_v8  ;;  %522 = vmatpush.msra.mxu2 %v760_v12  ;;  %v556_v8 = vlaneseq }
  0x42   :  { %483 = vmatpush.msra.mxu0 %v693_v62  ;;  %502 = vmatpush.msra.mxu1 %v728_v63  ;;  %v851_v63 = vld [vmem:[%s1112_s6] ss:$0 sm:$0xff] }
  0x43   :  { %542 = vmatpush.msra.mxu3 %v792_v13  ;;  %523 = vmatpush.msra.mxu2 %v757_v19  ;;  %v557_v9 = vand.u32 127, %v556_v8 }
  0x44   :  { %484 = vmatpush.msra.mxu0 %v692_v2  ;;  %503 = vmatpush.msra.mxu1 %v725_v6 }
  0x45   :  { %543 = vmatpush.msra.mxu3 %v789_v20  ;;  %524 = vmatpush.msra.mxu2 %v756_v24  ;;  %v576_v24 = vld [vmem:[%s1113_s7] sm:$0x1]  ;;  %s989_s7 = smov [#allocation8]  }
  0x46   :  { %485 = vmatpush.msra.mxu0 %v689_v10  ;;  %504 = vmatpush.msra.mxu1 %v724_v11 }
  0x47   :  { %544 = vmatpush.msra.mxu3 %v788_v25  ;;  %525 = vmatpush.msra.mxu2 %v753_v31 }
  0x48   :  { %486 = vmatpush.msra.mxu0 %v688_v17  ;;  %505 = vmatpush.msra.mxu1 %v721_v18  ;;  %v597_v18 = vld [vmem:[%s1114_s8] sm:$0xff]  ;;  %s637_s8 = sshll.u32 %s989_s7, 4  ;;  %s638_s8 = int_to_ptr.vmem [resolvable:$true] %s637_s8 }
  0x49   :  { %545 = vmatpush.msra.mxu3 %v785_v32  ;;  %526 = vmatpush.msra.mxu2 %v752_v34 }
  0x4a   :  { %487 = vmatpush.msra.mxu0 %v685_v22  ;;  %506 = vmatpush.msra.mxu1 %v720_v23 }
  0x4b   :  { %546 = vmatpush.msra.mxu3 %v784_v35  ;;  %527 = vmatpush.msra.mxu2 %v749_v38 }
  0x4c   :  { %488 = vmatpush.msra.mxu0 %v684_v29  ;;  %507 = vmatpush.msra.mxu1 %v717_v30 }
  0x4d   :  { %547 = vmatpush.msra.mxu3 %v781_v39  ;;  %528 = vmatpush.msra.mxu2 %v748_v40 }
  0x4e   :  { %508 = vmatpush.msra.mxu1 %v716_v33 }
  0x4f   :  { %548 = vmatpush.msra.mxu3 %v780_v41 }
  0x9f   :  { %v180_v42 = vpop.f32.mrf.mxu0 }
  0xa3   :  { %v200_v43 = vpop.f32.mrf.mxu1 }
  0xa6   :  { %v220_v45 = vpop.f32.mrf.mxu2  ;;  %v240_v46 = vpop.f32.mrf.mxu3 }
  0xa9   :  { %v264_v48 = vpop.f32.mrf.mxu0 }
  0xaa   :  { %v265_v49 = vadd.f32 %v264_v48, %v180_v42 }
  0xac   :  { %v337_v51 = vadd.f32 %v329_v47, %v265_v49  ;;  %v284_v52 = vpop.f32.mrf.mxu1 }
  0xad   :  { %v285_v53 = vadd.f32 %v284_v52, %v200_v43 }
  0xae   :  { %489 = vmatmul.f32.vlgmr.msra.gmra.mxu0 %v337_v51 }
  0xaf   :  { %v338_v54 = vadd.f32 %v330_v50, %v285_v53  ;;  %v991_v50 = vmov 0  }
  0xb0   :  { %v304_v57 = vpop.f32.mrf.mxu2  ;;  %v324_v58 = vpop.f32.mrf.mxu3 }
  0xb1   :  { %v305_v59 = vadd.f32 %v304_v57, %v220_v45  ;;  %v325_v60 = vadd.f32 %v324_v58, %v240_v46  ;;  %509 = vmatmul.f32.vlgmr.msra.gmra.mxu1 %v338_v54 }
  0xb3   :  { %v339_v61 = vadd.f32 %v331_v55, %v305_v59  ;;  %v340_v62 = vadd.f32 %v332_v56, %v325_v60 }
  0xb5   :  { %529 = vmatmul.f32.vlgmr.msra.gmra.mxu2 %v339_v61  ;;  %549 = vmatmul.f32.vlgmr.msra.gmra.mxu3 %v340_v62 }
 0x12b   :  { %v490_v0 = vpop.f32.mrf.mxu0 }
 0x12c   :  { %v491_v1 = vadd.f32 %v851_v63, %v490_v0 }
 0x12e   :  { %v510_v2 = vpop.f32.mrf.mxu1 }
 0x12f   :  { %v511_v3 = vadd.f32 %v510_v2, %v491_v1 }
 0x138   :  { %v530_v4 = vpop.f32.mrf.mxu2  ;;  %v550_v6 = vpop.f32.mrf.mxu3 }
 0x139   :  { %v531_v5 = vadd.f32 %v530_v4, %v511_v3 }
 0x13b   :  { %v551_v7 = vadd.f32 %v550_v6, %v531_v5 }
 0x13d   :  { %553 = vst [vmem:[#allocation8] sm:$0xff] %v551_v7  ;;  %554 = vmax.xlane.f32.xlu0 %v551_v7 }
 0x13e   :  { %642 = dma.vmem_to_hbm [thread:$0]  %s638_s8, 128, %s640_s30, [#allocation4]  }
 0x1b0   :  { %v555_v10 = vpop.xlane.xlu0 %554 }
 0x1b1   :  { %vm558_vm2 = vcmp.ge.f32.partialorder %v551_v7, %v555_v10 }
 0x1b2   :  { %v559_v11 = vsel %vm558_vm2, %v557_v9, 128 }
 0x1b3   :  { %v561_v12 = vshra.s32 %v559_v11, 16  ;;  %v560_v14 = vand.u32 65535, %v559_v11 }
 0x1b5   :  { %v563_v13 = vcvt.s32.f32 %v561_v12  ;;  %v562_v16 = vcvt.s32.f32 %v560_v14 }
 0x1b7   :  { %564 = vmin.xlane.f32.xlu0 %v563_v13 }
 0x22a   :  { %v565_v15 = vpop.xlane.xlu0 %564 }
 0x22b   :  { %vm566_vm3 = vcmp.eq.f32.partialorder %v563_v13, %v565_v15  ;;  %v571_v19 = vcvt.f32.s32 %v565_v15 }
 0x22c   :  { %v567_v17 = vsel %vm566_vm3, %v562_v16, inf }
 0x22d   :  { %568 = vmin.xlane.f32.xlu1 %v567_v17  ;;  %v572_v21 = vshll.u32 %v571_v19, 16 }
 0x235   :  { %598 = vmax.xlane.f32.xlu1 %v597_v18 }
 0x2a0   :  { %v569_v20 = vpop.xlane.xlu1 %568 }
 0x2a1   :  { %v570_v22 = vcvt.f32.s32 %v569_v20 }
 0x2a3   :  { %v573_v23 = vadd.s32 %v572_v21, %v570_v22 }
 0x2a5   :  { %575 = vst.msk [vmem:[%s1116_s10] sm:$0xff] %vm574_vm4, %v573_v23  ;;  %vm577_vm6 = vcmp.eq.s32.totalorder %v557_v9, %v573_v23 }
 0x2a6   :  { %v578_v25 = vsel %vm577_vm6, %v576_v24, 1073741824 }
 0x2a7   :  { %v580_v26 = vsel %vm579_vm5, %v578_v25, 2147483647 }
 0x2a8   :  { %v582_v27 = vshra.s32 %v580_v26, 16  ;;  %v599_v28 = vpop.xlane.xlu1 %598  ;;  %v581_v36 = vand.u32 65535, %v580_v26 }
 0x2a9   :  { %vm605_vm7 = vcmp.ge.f32.partialorder %v597_v18, %v599_v28  ;;  %v600_v32 = vsub.f32 %v597_v18, %v599_v28 }
 0x2aa   :  { %v584_v29 = vcvt.s32.f32 %v582_v27  ;;  %v606_v30 = vsel %vm605_vm7, %v557_v9, 128  ;;  %v583_v38 = vcvt.s32.f32 %v581_v36 }
 0x2ab   :  { %v608_v31 = vshra.s32 %v606_v30, 16  ;;  %v601_v34 = vmul.f32 1.442695, %v600_v32  ;;  %v607_v40 = vand.u32 65535, %v606_v30 }
 0x2ac   :  { %585 = vmin.xlane.f32.xlu2 %v584_v29 }
 0x2ad   :  { %v610_v33 = vcvt.s32.f32 %v608_v31  ;;  %852 = vpow2.f32 %v601_v34  ;;  %v609_v42 = vcvt.s32.f32 %v607_v40 }
 0x2b3   :  { %v853_v35 = vpop.eup %852 }
 0x2b4   :  { %611 = vmin.xlane.f32.xlu2 %v610_v33 }
 0x2bc   :  { %603 = vadd.xlane.f32.xlu2 %v853_v35 }
 0x31f   :  { %v586_v37 = vpop.xlane.xlu2 %585 }
 0x320   :  { %vm587_vm8 = vcmp.eq.f32.partialorder %v584_v29, %v586_v37  ;;  %v592_v44 = vcvt.f32.s32 %v586_v37 }
 0x321   :  { %v588_v39 = vsel %vm587_vm8, %v583_v38, inf }
 0x322   :  { %589 = vmin.xlane.f32.xlu0 %v588_v39  ;;  %v593_v46 = vshll.u32 %v592_v44, 16 }
 0x327   :  { %v612_v41 = vpop.xlane.xlu2 %611 }
 0x328   :  { %vm613_vm9 = vcmp.eq.f32.partialorder %v610_v33, %v612_v41  ;;  %v618_v49 = vcvt.f32.s32 %v612_v41 }
 0x329   :  { %v614_v43 = vsel %vm613_vm9, %v609_v42, inf }
 0x32a   :  { %615 = vmin.xlane.f32.xlu1 %v614_v43  ;;  %v619_v53 = vshll.u32 %v618_v49, 16 }
 0x32f   :  { %v604_v55 = vpop.xlane.xlu2 %603 }
 0x330   :  { %vm623_vm12 = vcmp.lt.f32.partialorder %v604_v55, 2.0 }
 0x395   :  { %v590_v45 = vpop.xlane.xlu0 %589 }
 0x396   :  { %v591_v47 = vcvt.f32.s32 %v590_v45 }
 0x398   :  { %v594_v48 = vadd.s32 %v593_v46, %v591_v47 }
 0x39a   :  { %vm625_vm11 = vcmp.ge.s32.totalorder %v594_v48, 0  ;;  %596 = vst.msk [vmem:[#allocation9] sm:$0x1] %vm595_vm10, %v594_v48  ;;  %v621_v57 = vperm.slane %v594_v48, 0 }
 0x39b   :  { %655 = dma.vmem_to_hbm [thread:$0]  %s651_s14, 16, %s653_s17, [#allocation10]   ;;  %v626_v51 = vsel %vm625_vm11, 1, %v991_v50 }
 0x39c   :  { %v627_v56 = vperm.slane %v626_v51, 0 }
 0x39d   :  { %v616_v52 = vpop.xlane.xlu1 %615 }
 0x39e   :  { %v617_v54 = vcvt.f32.s32 %v616_v52  ;;  %vm628_vm14 = vcmp.eq.s32.totalorder %v627_v56, 1 }
 0x3a0   :  { %v620_v58 = vadd.s32 %v619_v53, %v617_v54 }
 0x3a2   :  { %vm622_vm13 = vcmp.eq.s32.totalorder %v620_v58, %v621_v57 }
 0x3a3   :  { %vm624_vm15 = vmand %vm622_vm13, %vm623_vm12 }
 0x3a4   :  { %vm629_vm0 = vmand %vm624_vm15, %vm628_vm14 }
 0x3a5   :  { %v630_v59 = vsel %vm629_vm0, 1, %v991_v50 }
 0x3a6   :  { %631 = vst.msk [vmem:[%s1118_s12] sm:$0xff] %vm574_vm4, %v630_v59 }
 0x3a7   :  { %978 = dma.done.wait [#allocation4], 128  }
 0x3a8   :  { %979 = vsyncadd [#allocation4], 4294967168 }
 0x3a9   :  { %980 = dma.done.wait [#allocation10], 16  }
 0x3aa   :  { %981 = vsyncadd [#allocation10], 4294967280 }
 0x3ab   :  { %670 = vsyncpa [#allocation3], 1 }
 0x3ac   :  { %671 = vsyncpa [#allocation6], 1 }
 0x3ad   :  { %672 = vsyncpa [#allocation4], 1 }
 0x3ae   :  { %673 = vsyncpa [#allocation10], 1 }

</bundles_post_ra>
